<compile_context>
chip_gen: v7x
topology: tpu7x:2x2x1
jax: 0.10.0
libtpu: 0.0.40
codegen_flags: <defaults>
</compile_context>

<pallas_src>
import jax
import jax.numpy as jnp
from jax.experimental import pallas as pl
from jax.experimental.pallas import tpu as pltpu


def _mlp_kernel(m_ref, r_ref, d_ref,
                w1_ref, b1_ref,
                w2_ref, b2_ref,
                w3_ref, b3_ref,
                o_ref,
                xcat_ref):
    n_map = m_ref.shape[1]
    n_rgb = r_ref.shape[1]
    n_depth = d_ref.shape[1]

    # ---- fused concat in VMEM (no host concat, no extra HBM traffic) -------
    xcat_ref[:, 0:n_map] = m_ref[...]
    xcat_ref[:, n_map:n_map + n_rgb] = r_ref[...]
    xcat_ref[:, n_map + n_rgb:n_map + n_rgb + n_depth] = d_ref[...]
    x = xcat_ref[...].astype(jnp.bfloat16)                       # (tb, d_in)

    # ---- Linear(d_in, 512) + ReLU : single K=d_in MXU matmul ---------------
    h1 = jnp.dot(x, w1_ref[...], preferred_element_type=jnp.float32) + b1_ref[...]
    h1 = jnp.maximum(h1, 0.0)

    # ---- Linear(512, 256) + ReLU -------------------------------------------
    h2 = jnp.dot(h1.astype(jnp.bfloat16), w2_ref[...],
                 preferred_element_type=jnp.float32) + b2_ref[...]
    h2 = jnp.maximum(h2, 0.0)

    # ---- Linear(256, 1) + Sigmoid, emitted lane-dense as a (1, tb) row -----
    # Contract the shared 256 axis of w3 (1,256) and h2 (tb,256) so the batch
    # lands on lanes: full-lane output stores, no (tb,1)->(1,tb) relayout.
    logits = jax.lax.dot_general(
        w3_ref[...], h2.astype(jnp.bfloat16),
        dimension_numbers=(((1,), (1,)), ((), ())),
        preferred_element_type=jnp.float32) + b3_ref[...]         # (1, tb)
    o_ref[...] = jax.nn.sigmoid(logits).astype(o_ref.dtype)


def _pick_block_b(B):
    """Batch tile: prefer multiples of 256 (MXU M dim), cap at 2048 (v7x VMEM),
    and try to leave >= 2 grid steps so both v7x TensorCores get work."""
    tb = None
    for c in (2048, 1792, 1536, 1280, 1024, 768, 512, 256):
        if B % c == 0:
            tb = c
            break
    if tb is None:
        for c in (128, 64, 32, 16, 8):
            if B % c == 0:
                tb = c
                break
    if tb is None:
        tb = B  # odd batch: single full-batch step (correct, just un-pipelined)
    # v7x dual-core: halve while that keeps a multiple-of-8 sublane tile.
    while B // tb < 2 and tb % 16 == 0 and B % (tb // 2) == 0:
        tb //= 2
    return tb


def progress_prediction_head(map_features, rgb_features, depth_features, params):
    """Pallas equivalent of ProgressPredictionHead.forward."""
    B, n_map = map_features.shape
    n_rgb = rgb_features.shape[1]
    n_depth = depth_features.shape[1]
    d_in = n_map + n_rgb + n_depth

    w1, b1, w2, b2, w3, b3 = params
    H1, H2 = w1.shape[1], w2.shape[1]            # 512, 256

    # bf16 matmul weights (MXU native); biases stay f32.
    w1_bf = w1.astype(jnp.bfloat16)               # (d_in, 512)
    w2_bf = w2.astype(jnp.bfloat16)               # (512, 256)
    w3_row = w3.reshape(1, H2).astype(jnp.bfloat16)   # (1, 256)
    b3_2d = b3.reshape(1, 1).astype(jnp.float32)

    tb = _pick_block_b(B)
    num_blocks = B // tb
    grid = (num_blocks,)

    act = lambda cols: pl.BlockSpec((tb, cols), lambda i: (i, 0))
    resident = lambda shape: pl.BlockSpec(shape, lambda i: (0, 0))

    # Honest VMEM accounting: double-buffered residents + double-buffered
    # activation/output tiles + f32 concat scratch + in-kernel f32/bf16 temps.
    weight_vmem = 2 * ((w1_bf.size + w2_bf.size + w3_row.size) * 2
                       + (b1.size + b2.size + b3_2d.size) * 4)
    io_vmem = 2 * tb * d_in * 4 + 2 * tb * 4
    scratch_vmem = tb * d_in * 4
    temp_vmem = tb * (d_in * 2 + H1 * (4 + 2) + H2 * (4 + 2) + 8)
    vmem_limit = int(min(48 << 20,
                         max(8 << 20,
                             2 * (weight_vmem + io_vmem + scratch_vmem + temp_vmem))))

    cost = pl.CostEstimate(
        flops=2 * B * (d_in * H1 + H1 * H2 + H2),
        transcendentals=B,
        bytes_accessed=(B * d_in * 4
                        + (w1_bf.size + w2_bf.size + w3_row.size) * 2
                        + (b1.size + b2.size + b3_2d.size) * 4
                        + B * 4),
    )

    out2d = pl.pallas_call(
        _mlp_kernel,
        out_shape=jax.ShapeDtypeStruct((num_blocks, tb), jnp.float32),
        grid=grid,
        in_specs=[
            act(n_map), act(n_rgb), act(n_depth),
            resident((d_in, H1)), resident((1, H1)),
            resident((H1, H2)), resident((1, H2)),
            resident((1, H2)), resident((1, 1)),
        ],
        out_specs=pl.BlockSpec((1, tb), lambda i: (i, 0)),
        scratch_shapes=[pltpu.VMEM((tb, d_in), jnp.float32)],
        compiler_params=pltpu.CompilerParams(
            dimension_semantics=("parallel",),
            vmem_limit_bytes=vmem_limit,
        ),
        cost_estimate=cost,
    )(map_features, rgb_features, depth_features,
      w1_bf, b1, w2_bf, b2, w3_row, b3_2d)

    return out2d.reshape(B, 1)


def init_params(key, n_map, n_rgb, n_depth):
    """Deterministic PyTorch-style (uniform +-1/sqrt(fan_in)) init, f32 master."""
    d_in = n_map + n_rgb + n_depth
    dims = [(d_in, 512), (512, 256), (256, 1)]
    params = []
    for (fan_in, fan_out) in dims:
        key, kw, kb = jax.random.split(key, 3)
        bound = 1.0 / jnp.sqrt(fan_in)
        w = jax.random.uniform(kw, (fan_in, fan_out), jnp.float32, -bound, bound)
        b = jax.random.uniform(kb, (1, fan_out), jnp.float32, -bound, bound)
        params += [w, b]
    return tuple(params)


def _reference(map_f, rgb_f, depth_f, params):
    w1, b1, w2, b2, w3, b3 = params
    x = jnp.concatenate([map_f, rgb_f, depth_f], axis=1)
    h = jax.nn.relu(x @ w1 + b1)
    h = jax.nn.relu(h @ w2 + b2)
    return jax.nn.sigmoid(h @ w3 + b3)


if __name__ == "__main__":
    key = jax.random.PRNGKey(0)
    B, n_map, n_rgb, n_depth = 8, 32, 32, 32

    key, k1, k2, k3, kp = jax.random.split(key, 5)
    map_f = jax.random.normal(k1, (B, n_map), jnp.float32)
    rgb_f = jax.random.normal(k2, (B, n_rgb), jnp.float32)
    depth_f = jax.random.normal(k3, (B, n_depth), jnp.float32)

    params = init_params(kp, n_map, n_rgb, n_depth)

    out = progress_prediction_head(map_f, rgb_f, depth_f, params)
    out = jax.block_until_ready(out)

    ref = _reference(map_f, rgb_f, depth_f, params)
    assert out.shape == (B, 1), out.shape
    # bf16 matmul weights vs. f32 reference -> relaxed tolerance on sigmoid output.
    assert jnp.allclose(out, ref, atol=2e-2, rtol=2e-2), (out, ref)

    print("KERNEL_OK")
</pallas_src>

<mosaic_0001>
module attributes {stable_mosaic.version = 11 : i64} {
  func.func @_mlp_kernel(%arg0: i32, %arg1: memref<8x32xf32, #tpu.memory_space<vmem>>, %arg2: memref<8x32xf32, #tpu.memory_space<vmem>>, %arg3: memref<8x32xf32, #tpu.memory_space<vmem>>, %arg4: memref<96x512xbf16, #tpu.memory_space<vmem>>, %arg5: memref<1x512xf32, #tpu.memory_space<vmem>>, %arg6: memref<512x256xbf16, #tpu.memory_space<vmem>>, %arg7: memref<1x256xf32, #tpu.memory_space<vmem>>, %arg8: memref<1x256xbf16, #tpu.memory_space<vmem>>, %arg9: memref<1x1xf32, #tpu.memory_space<vmem>>, %arg10: memref<1x8xf32, #tpu.memory_space<vmem>>, %arg11: memref<8x96xf32, #tpu.memory_space<vmem>>) attributes {dimension_semantics = [#tpu.dimension_semantics<parallel>], iteration_bounds = array<i64: 1>, scalar_prefetch = 0 : i64, scratch_operands = 1 : i64, tpu.core_type = #tpu.core_type<tc>, window_params = [{transform_indices = @transform_0, window_bounds = array<i64: 8, 32>}, {transform_indices = @transform_1, window_bounds = array<i64: 8, 32>}, {transform_indices = @transform_2, window_bounds = array<i64: 8, 32>}, {pipeline_mode = #tpu.pipeline_mode<synchronous>, transform_indices = @transform_3, window_bounds = array<i64: 96, 512>}, {pipeline_mode = #tpu.pipeline_mode<synchronous>, transform_indices = @transform_4, window_bounds = array<i64: 1, 512>}, {pipeline_mode = #tpu.pipeline_mode<synchronous>, transform_indices = @transform_5, window_bounds = array<i64: 512, 256>}, {pipeline_mode = #tpu.pipeline_mode<synchronous>, transform_indices = @transform_6, window_bounds = array<i64: 1, 256>}, {pipeline_mode = #tpu.pipeline_mode<synchronous>, transform_indices = @transform_7, window_bounds = array<i64: 1, 256>}, {pipeline_mode = #tpu.pipeline_mode<synchronous>, transform_indices = @transform_8, window_bounds = array<i64: 1, 1>}, {transform_indices = @transform_9, window_bounds = array<i64: 1, 8>}]} {
    %c0 = arith.constant 0 : index
    %c0_0 = arith.constant 0 : index
    %0 = vector.load %arg1[%c0, %c0_0] : memref<8x32xf32, #tpu.memory_space<vmem>>, vector<8x32xf32>
    %c0_1 = arith.constant 0 : index
    %c0_2 = arith.constant 0 : index
    %1 = vector.load %arg11[%c0_1, %c0_2] : memref<8x96xf32, #tpu.memory_space<vmem>>, vector<8x32xf32>
    tpu.vector_store %arg11[%c0_1, %c0_2], %0 {strides = array<i32>} : memref<8x96xf32, #tpu.memory_space<vmem>>, vector<8x32xf32>,
    %c0_3 = arith.constant 0 : index
    %c0_4 = arith.constant 0 : index
    %2 = vector.load %arg2[%c0_3, %c0_4] : memref<8x32xf32, #tpu.memory_space<vmem>>, vector<8x32xf32>
    %c0_5 = arith.constant 0 : index
    %c32 = arith.constant 32 : index
    %3 = vector.load %arg11[%c0_5, %c32] : memref<8x96xf32, #tpu.memory_space<vmem>>, vector<8x32xf32>
    tpu.vector_store %arg11[%c0_5, %c32], %2 {strides = array<i32>} : memref<8x96xf32, #tpu.memory_space<vmem>>, vector<8x32xf32>,
    %c0_6 = arith.constant 0 : index
    %c0_7 = arith.constant 0 : index
    %4 = vector.load %arg3[%c0_6, %c0_7] : memref<8x32xf32, #tpu.memory_space<vmem>>, vector<8x32xf32>
    %c0_8 = arith.constant 0 : index
    %c64 = arith.constant 64 : index
    %5 = vector.load %arg11[%c0_8, %c64] : memref<8x96xf32, #tpu.memory_space<vmem>>, vector<8x32xf32>
    tpu.vector_store %arg11[%c0_8, %c64], %4 {strides = array<i32>} : memref<8x96xf32, #tpu.memory_space<vmem>>, vector<8x32xf32>,
    %c0_9 = arith.constant 0 : index
    %c0_10 = arith.constant 0 : index
    %6 = vector.load %arg11[%c0_9, %c0_10] : memref<8x96xf32, #tpu.memory_space<vmem>>, vector<8x96xf32>
    %7 = arith.truncf %6 : vector<8x96xf32> to vector<8x96xbf16>
    %c0_11 = arith.constant 0 : index
    %c0_12 = arith.constant 0 : index
    %8 = vector.load %arg4[%c0_11, %c0_12] : memref<96x512xbf16, #tpu.memory_space<vmem>>, vector<96x512xbf16>
    %cst = arith.constant dense<0.000000e+00> : vector<8x512xf32>
    %9 = tpu.matmul %7, %8, %cst {dimension_numbers = #tpu.dot_dimension_numbers<[1], [0], [0], [1], [0, 0, 1, 1], [], []>} : vector<8x96xbf16>, vector<96x512xbf16>, vector<8x512xf32> -> vector<8x512xf32>
    %c0_13 = arith.constant 0 : index
    %c0_14 = arith.constant 0 : index
    %10 = vector.load %arg5[%c0_13, %c0_14] : memref<1x512xf32, #tpu.memory_space<vmem>>, vector<1x512xf32>
    %11 = vector.broadcast %10 : vector<1x512xf32> to vector<8x512xf32>
    %12 = arith.addf %9, %11 : vector<8x512xf32>
    %cst_15 = arith.constant 0.000000e+00 : f32
    %13 = vector.broadcast %cst_15 : f32 to vector<8x512xf32>
    %14 = arith.maximumf %12, %13 : vector<8x512xf32>
    %15 = arith.truncf %14 : vector<8x512xf32> to vector<8x512xbf16>
    %c0_16 = arith.constant 0 : index
    %c0_17 = arith.constant 0 : index
    %16 = vector.load %arg6[%c0_16, %c0_17] : memref<512x256xbf16, #tpu.memory_space<vmem>>, vector<512x256xbf16>
    %cst_18 = arith.constant dense<0.000000e+00> : vector<8x256xf32>
    %17 = tpu.matmul %15, %16, %cst_18 {dimension_numbers = #tpu.dot_dimension_numbers<[1], [0], [0], [1], [0, 0, 1, 1], [], []>} : vector<8x512xbf16>, vector<512x256xbf16>, vector<8x256xf32> -> vector<8x256xf32>
    %c0_19 = arith.constant 0 : index
    %c0_20 = arith.constant 0 : index
    %18 = vector.load %arg7[%c0_19, %c0_20] : memref<1x256xf32, #tpu.memory_space<vmem>>, vector<1x256xf32>
    %19 = vector.broadcast %18 : vector<1x256xf32> to vector<8x256xf32>
    %20 = arith.addf %17, %19 : vector<8x256xf32>
    %cst_21 = arith.constant 0.000000e+00 : f32
    %21 = vector.broadcast %cst_21 : f32 to vector<8x256xf32>
    %22 = arith.maximumf %20, %21 : vector<8x256xf32>
    %c0_22 = arith.constant 0 : index
    %c0_23 = arith.constant 0 : index
    %23 = vector.load %arg8[%c0_22, %c0_23] : memref<1x256xbf16, #tpu.memory_space<vmem>>, vector<1x256xbf16>
    %24 = arith.truncf %22 : vector<8x256xf32> to vector<8x256xbf16>
    %cst_24 = arith.constant dense<0.000000e+00> : vector<1x8xf32>
    %25 = tpu.matmul %23, %24, %cst_24 {dimension_numbers = #tpu.dot_dimension_numbers<[1], [1], [0], [0], [0, 0, 1, 0], [], []>} : vector<1x256xbf16>, vector<8x256xbf16>, vector<1x8xf32> -> vector<1x8xf32>
    %c0_25 = arith.constant 0 : index
    %c0_26 = arith.constant 0 : index
    %26 = vector.load %arg9[%c0_25, %c0_26] : memref<1x1xf32, #tpu.memory_space<vmem>>, vector<1x1xf32>
    %27 = vector.broadcast %26 : vector<1x1xf32> to vector<1x8xf32>
    %28 = arith.addf %25, %27 : vector<1x8xf32>
    %29 = arith.negf %28 : vector<1x8xf32>
    %30 = math.exp %29 : vector<1x8xf32>
    %cst_27 = arith.constant 1.000000e+00 : f32
    %31 = vector.broadcast %cst_27 : f32 to vector<1x8xf32>
    %32 = arith.addf %31, %30 : vector<1x8xf32>
    %33 = arith.divf %31, %32 : vector<1x8xf32>
    %c0_28 = arith.constant 0 : index
    %c0_29 = arith.constant 0 : index
    %34 = vector.load %arg10[%c0_28, %c0_29] : memref<1x8xf32, #tpu.memory_space<vmem>>, vector<1x8xf32>
    tpu.vector_store %arg10[%c0_28, %c0_29], %33 {strides = array<i32>} : memref<1x8xf32, #tpu.memory_space<vmem>>, vector<1x8xf32>,
    return
  }
  func.func @transform_0(%arg0: i32) -> (i32, i32) {
    %c0_i32 = arith.constant 0 : i32
    %c0_i32_0 = arith.constant 0 : i32
    return %arg0, %c0_i32 : i32, i32
  }
  func.func @transform_1(%arg0: i32) -> (i32, i32) {
    %c0_i32 = arith.constant 0 : i32
    %c0_i32_0 = arith.constant 0 : i32
    return %arg0, %c0_i32 : i32, i32
  }
  func.func @transform_2(%arg0: i32) -> (i32, i32) {
    %c0_i32 = arith.constant 0 : i32
    %c0_i32_0 = arith.constant 0 : i32
    return %arg0, %c0_i32 : i32, i32
  }
  func.func @transform_3(%arg0: i32) -> (i32, i32) {
    %c0_i32 = arith.constant 0 : i32
    %c0_i32_0 = arith.constant 0 : i32
    %c0_i32_1 = arith.constant 0 : i32
    return %c0_i32, %c0_i32_0 : i32, i32
  }
  func.func @transform_4(%arg0: i32) -> (i32, i32) {
    %c0_i32 = arith.constant 0 : i32
    %c0_i32_0 = arith.constant 0 : i32
    %c0_i32_1 = arith.constant 0 : i32
    return %c0_i32, %c0_i32_0 : i32, i32
  }
  func.func @transform_5(%arg0: i32) -> (i32, i32) {
    %c0_i32 = arith.constant 0 : i32
    %c0_i32_0 = arith.constant 0 : i32
    %c0_i32_1 = arith.constant 0 : i32
    return %c0_i32, %c0_i32_0 : i32, i32
  }
  func.func @transform_6(%arg0: i32) -> (i32, i32) {
    %c0_i32 = arith.constant 0 : i32
    %c0_i32_0 = arith.constant 0 : i32
    %c0_i32_1 = arith.constant 0 : i32
    return %c0_i32, %c0_i32_0 : i32, i32
  }
  func.func @transform_7(%arg0: i32) -> (i32, i32) {
    %c0_i32 = arith.constant 0 : i32
    %c0_i32_0 = arith.constant 0 : i32
    %c0_i32_1 = arith.constant 0 : i32
    return %c0_i32, %c0_i32_0 : i32, i32
  }
  func.func @transform_8(%arg0: i32) -> (i32, i32) {
    %c0_i32 = arith.constant 0 : i32
    %c0_i32_0 = arith.constant 0 : i32
    %c0_i32_1 = arith.constant 0 : i32
    return %c0_i32, %c0_i32_0 : i32, i32
  }
  func.func @transform_9(%arg0: i32) -> (i32, i32) {
    %c0_i32 = arith.constant 0 : i32
    %c0_i32_0 = arith.constant 0 : i32
    return %arg0, %c0_i32 : i32, i32
  }
}

</mosaic_0001>

<bundles_post_ra>
// kernel: tpu_custom_call.1
= control target key start
LH: loop header
LB: loop body
LE: loop exit
PB: predicated region body
PF: predicated region fallthrough
CT: control target
= control target key end

     0   :  { %s1457_s0 = inlined_call_operand.hbm [shape: f32[8,32], index: 0, kind: input, shape index: {}]   ;;  %s1458_s1 = inlined_call_operand.hbm [shape: f32[8,32], index: 1, kind: input, shape index: {}]   ;;  %s1459_s2 = inlined_call_operand.vmem [shape: f32[8,32], index: 2, kind: input, shape index: {}]   ;;  %s1460_s3 = inlined_call_operand.hbm [shape: bf16[96,512], index: 3, kind: input, shape index: {}]   ;;  %s1461_s4 = inlined_call_operand.vmem [shape: f32[1,512], index: 4, kind: input, shape index: {}]   ;;  %s1462_s5 = inlined_call_operand.hbm [shape: bf16[512,256], index: 5, kind: input, shape index: {}]   ;;  %s1463_s6 = inlined_call_operand.vmem [shape: f32[1,256], index: 6, kind: input, shape index: {}]   ;;  %s1464_s7 = inlined_call_operand.vmem [shape: bf16[1,256], index: 7, kind: input, shape index: {}]   ;;  %s1465_s8 = inlined_call_operand.<no memory space> [shape: f32[1,1], index: 8, kind: input, shape index: {}]   ;;  %s1466_s9 = inlined_call_operand.hbm [shape: f32[1,8], index: 9, kind: output, shape index: {}]  }
   0x1   :  { %v14_v0 = vstv %s1465_s8 }
   0x2   :  { %15 = vst [vmem:[#allocation3] sm:$0x1] %v14_v0 }
   0x3   :  { %16 = vsyncpa [#allocation5], 0 }
   0x4   :  { %17 = vsyncpa [#allocation8], 0 }
   0x5   :  { %18 = vsyncpa [#allocation11], 0 }
   0x6   :  { %19 = vsyncpa [#allocation6], 0  ;;  %s1314_s11 = smov [#allocation7]   ;;  %s1315_s13 = smov [#allocation4]  }
   0x7   :  { %s36_s12 = sshll.u32 %s1314_s11, 4  ;;  %s26_s14 = sshll.u32 %s1315_s13, 4  ;;  %s37_s12 = int_to_ptr.vmem [resolvable:$true] %s36_s12  ;;  %s27_s14 = int_to_ptr.vmem [resolvable:$true] %s26_s14 }
   0x8   :  { %s1196_s17 = scalar_lea.hbm %s1458_s1, 128 }
   0x9   :  { %p1197_p0 = scmp.ne.s32.totalorder %s1458_s1, %s1196_s17  ;;  %p1200_p1 = scmp.lt.u32.totalorder %s1196_s17, %s1458_s1 }
   0xb   :  { %p1202_p2 = pnand %p1200_p1, %p1197_p0 }
   0xd   :  { %1205 = shalt.err (!%p1202_p2)
}
   0xe   :  { %s1206_s21 = scalar_lea.vmem %s37_s12, 128  ;;  %p1211_p4 = scmp.lt.s32.totalorder %s37_s12, %s37_s12 }
   0xf   :  { %p1207_p3 = scmp.ne.s32.totalorder %s37_s12, %s1206_s21  ;;  %p1212_p5 = scmp.lt.s32.totalorder %s1206_s21, %s1206_s21 }
  0x11   :  { %p1213_p6 = por %p1212_p5, %p1211_p4 }
  0x13   :  { %p1214_p7 = pnand %p1213_p6, %p1207_p3 }
  0x15   :  { %1217 = shalt.err (!%p1214_p7)
}
  0x16   :  { %39 = dma.hbm_to_vmem [thread:$0]  %s1458_s1, 128, %s37_s12, [#allocation8]  }
  0x17   :  { %s1218_s26 = scalar_lea.hbm %s1457_s0, 128 }
  0x18   :  { %p1219_p8 = scmp.ne.s32.totalorder %s1457_s0, %s1218_s26  ;;  %p1222_p9 = scmp.lt.u32.totalorder %s1218_s26, %s1457_s0 }
  0x1a   :  { %p1224_p10 = pnand %p1222_p9, %p1219_p8 }
  0x1c   :  { %1227 = shalt.err (!%p1224_p10)
}
  0x1d   :  { %s1228_s10 = scalar_lea.vmem %s27_s14, 128  ;;  %p1233_p12 = scmp.lt.s32.totalorder %s27_s14, %s27_s14 }
  0x1e   :  { %p1229_p11 = scmp.ne.s32.totalorder %s27_s14, %s1228_s10  ;;  %p1234_p13 = scmp.lt.s32.totalorder %s1228_s10, %s1228_s10 }
  0x20   :  { %p1235_p0 = por %p1234_p13, %p1233_p12 }
  0x22   :  { %p1236_p1 = pnand %p1235_p0, %p1229_p11 }
  0x24   :  { %1239 = shalt.err (!%p1236_p1)
}
  0x25   :  { %29 = dma.hbm_to_vmem [thread:$0]  %s1457_s0, 128, %s27_s14, [#allocation5]  }
  0x26   :  { %s1316_s12 = smov [#allocation9]   ;;  %s1240_s17 = scalar_lea.hbm %s1460_s3, 3072 }
  0x27   :  { %s47_s13 = sshll.u32 %s1316_s12, 4  ;;  %p1241_p2 = scmp.ne.s32.totalorder %s1460_s3, %s1240_s17  ;;  %s48_s13 = int_to_ptr.vmem [resolvable:$true] %s47_s13 }
  0x28   :  { %p1244_p3 = scmp.lt.u32.totalorder %s1240_s17, %s1460_s3 }
  0x2a   :  { %p1246_p4 = pnand %p1244_p3, %p1241_p2 }
  0x2c   :  { %1249 = shalt.err (!%p1246_p4)
}
  0x2d   :  { %s1250_s21 = scalar_lea.vmem %s48_s13, 3072  ;;  %p1255_p6 = scmp.lt.s32.totalorder %s48_s13, %s48_s13 }
  0x2e   :  { %p1251_p5 = scmp.ne.s32.totalorder %s48_s13, %s1250_s21  ;;  %p1256_p7 = scmp.lt.s32.totalorder %s1250_s21, %s1250_s21 }
  0x30   :  { %p1257_p8 = por %p1256_p7, %p1255_p6 }
  0x32   :  { %p1258_p9 = pnand %p1257_p8, %p1251_p5 }
  0x34   :  { %1261 = shalt.err (!%p1258_p9)
}
  0x35   :  { %s1317_s0 = smov 256   ;;  %s1318_s14 = smov 16  }
  0x36   :  { %53 = dma.hbm_to_vmem [thread:$0]  %s1460_s3, 3072, %s48_s13, [#allocation8], %s1317_s0, %s1317_s0, %s1318_s14  }
  0x37   :  { %s1319_s24 = smov [#allocation10]   ;;  %s1262_s28 = scalar_lea.hbm %s1462_s5, 8192 }
  0x38   :  { %s61_s25 = sshll.u32 %s1319_s24, 4  ;;  %p1263_p10 = scmp.ne.s32.totalorder %s1462_s5, %s1262_s28  ;;  %s62_s25 = int_to_ptr.vmem [resolvable:$true] %s61_s25 }
  0x39   :  { %p1266_p11 = scmp.lt.u32.totalorder %s1262_s28, %s1462_s5 }
  0x3b   :  { %p1268_p12 = pnand %p1266_p11, %p1263_p10 }
  0x3d   :  { %1271 = shalt.err (!%p1268_p12)
}
  0x3e   :  { %s1272_s11 = scalar_lea.vmem %s62_s25, 8192  ;;  %p1277_p0 = scmp.lt.s32.totalorder %s62_s25, %s62_s25 }
  0x3f   :  { %p1273_p13 = scmp.ne.s32.totalorder %s62_s25, %s1272_s11  ;;  %p1278_p1 = scmp.lt.s32.totalorder %s1272_s11, %s1272_s11 }
  0x41   :  { %p1279_p2 = por %p1278_p1, %p1277_p0 }
  0x43   :  { %p1280_p3 = pnand %p1279_p2, %p1273_p13 }
  0x45   :  { %1283 = shalt.err (!%p1280_p3)
}
  0x46   :  { %s1320_s3 = smov 128   ;;  %s1321_s12 = smov 8  }
  0x47   :  { %67 = dma.hbm_to_vmem [thread:$0]  %s1462_s5, 8192, %s62_s25, [#allocation11], %s1320_s3, %s1320_s3, %s1321_s12  }
  0x48   :  { %1306 = dma.done.wait [#allocation5], 128  }
  0x49   :  { %1307 = vsyncadd [#allocation5], 4294967168 }
  0x4a   :  { %1308 = dma.done.wait [#allocation8], 3200  }
  0x4b   :  { %1309 = vsyncadd [#allocation8], 4294964096 }
  0x4c   :  { %1310 = dma.done.wait [#allocation11], 8192  }
  0x4d   :  { %1311 = vsyncadd [#allocation11], 4294959104  ;;  %v1322_v1 = vmov 0   ;;  %v90_v2 = vld [vmem:[#allocation7] sm:$0xff]  ;;  %v97_v3 = vld [vmem:[%s1459_s2] sm:$0xff]  ;;  %s1323_s18 = smov 32  }
  0x4e   :  { %308 = vmatprep.mubr.bf16.mxu0 %v1322_v1  ;;  %349 = vmatprep.mubr.bf16.mxu1 %v1322_v1  ;;  %v1060_v4 = vld [vmem:[#allocation9 + $0x4] ss:$16 sps:$4 sm:$0xff]   ;;  %v1062_v5 = vld [vmem:[#allocation9 + $0xc] ss:$16 sps:$4 sm:$0xff]   ;;  %v1064_v6 = vld [vmem:[#allocation9] ss:$16 sps:$4 sm:$0xff]  }
  0x4f   :  { %1058 = vset.pattern.permute.xlu1 %v1322_v1  ;;  %1059 = vset.pattern.permute.xlu0 %v1322_v1  ;;  %v1065_v7 = vld [vmem:[#allocation9 + $0x8] ss:$16 sps:$4 sm:$0xff]   ;;  %v1066_v8 = vld [vmem:[#allocation9 + $0x24] ss:$16 sps:$4 sm:$0xff]   ;;  %s1324_s5 = smov 64   ;;  %vm88_vm0 = vcmask 261120  }
  0x50   :  { %92 = vrot.lane.b32.xlu0 %v90_v2, %s1323_s18  ;;  %276 = vmatprep.subr.bf16.mxu0 %v1060_v4  ;;  %v1068_v9 = vld [vmem:[#allocation9 + $0x2c] ss:$16 sps:$4 sm:$0xff]   ;;  %v1070_v10 = vld [vmem:[#allocation9 + $0x20] ss:$16 sps:$4 sm:$0xff]   ;;  %v1071_v11 = vld [vmem:[#allocation9 + $0x28] ss:$16 sps:$4 sm:$0xff]  }
  0x51   :  { %317 = vmatprep.subr.bf16.mxu1 %v1062_v5  ;;  %277 = vmatpush1.bf16.msra.mxu0 %v1064_v6  ;;  %v1072_v12 = vld [vmem:[#allocation9 + $0x44] ss:$16 sps:$4 sm:$0xff]   ;;  %v1074_v13 = vld [vmem:[#allocation9 + $0x4c] ss:$16 sps:$4 sm:$0xff]   ;;  %v1076_v14 = vld [vmem:[#allocation9 + $0x40] ss:$16 sps:$4 sm:$0xff]  }
  0x52   :  { %318 = vmatpush1.bf16.msra.mxu1 %v1065_v7  ;;  %278 = vmatprep.subr.bf16.mxu0 %v1066_v8  ;;  %v1077_v15 = vld [vmem:[#allocation9 + $0x48] ss:$16 sps:$4 sm:$0xff]   ;;  %v87_v16 = vld [vmem:[#allocation4] sm:$0xff]  ;;  %v1080_v18 = vld [vmem:[#allocation9 + $0x6c] ss:$16 sps:$4 sm:$0xff]   ;;  %vm95_vm1 = vcmask 523520  }
  0x53   :  { %319 = vmatprep.subr.bf16.mxu1 %v1068_v9  ;;  %89 = vst.msk [vmem:[#allocation2] sm:$0xff] %vm88_vm0, %v87_v16  ;;  %v1078_v17 = vld [vmem:[#allocation9 + $0x64] ss:$16 sps:$4 sm:$0xff]   ;;  %v1082_v19 = vld [vmem:[#allocation9 + $0x60] ss:$16 sps:$4 sm:$0xff]   ;;  %vm102_vm2 = vcmask 785920  }
  0x54   :  { %99 = vrot.lane.b32.xlu0 %v97_v3, %s1324_s5  ;;  %v1083_v20 = vld [vmem:[#allocation9 + $0x68] ss:$16 sps:$4 sm:$0xff]   ;;  %v1084_v21 = vld [vmem:[#allocation9 + $0x84] ss:$16 sps:$4 sm:$0xff]   ;;  %v1086_v22 = vld [vmem:[#allocation9 + $0x8c] ss:$16 sps:$4 sm:$0xff]  }
  0x55   :  { %279 = vmatpush1.bf16.msra.mxu0 %v1070_v10  ;;  %v1088_v23 = vld [vmem:[#allocation9 + $0x80] ss:$16 sps:$4 sm:$0xff]   ;;  %v1089_v24 = vld [vmem:[#allocation9 + $0x88] ss:$16 sps:$4 sm:$0xff]   ;;  %v1090_v25 = vld [vmem:[#allocation9 + $0xa4] ss:$16 sps:$4 sm:$0xff]  }
  0x56   :  { %320 = vmatpush1.bf16.msra.mxu1 %v1071_v11  ;;  %280 = vmatprep.subr.bf16.mxu0 %v1072_v12  ;;  %v1092_v26 = vld [vmem:[#allocation9 + $0xac] ss:$16 sps:$4 sm:$0xff]   ;;  %v1094_v27 = vld [vmem:[#allocation9 + $0xa0] ss:$16 sps:$4 sm:$0xff]   ;;  %v1095_v28 = vld [vmem:[#allocation9 + $0xa8] ss:$16 sps:$4 sm:$0xff]  }
  0x57   :  { %321 = vmatprep.subr.bf16.mxu1 %v1074_v13  ;;  %v1101_v29 = vld [vmem:[#allocation10 + $0x104] ss:$8 sps:$4 sm:$0xff]   ;;  %vm272_vm3 = vcmask 785408   ;;  %v1096_v34 = vld [vmem:[#allocation10] ss:$8 sps:$4 sm:$0xff]   ;;  %vm930_vm4 = vcmask 57344  }
  0x58   :  { %v1098_v30 = vld [vmem:[#allocation10 + $0x4] ss:$8 sps:$4 sm:$0xff]   ;;  %v1099_v35 = vld [vmem:[#allocation10 + $0x100] ss:$8 sps:$4 sm:$0xff]   ;;  %v1104_v37 = vld [vmem:[#allocation10 + $0x14] ss:$8 sps:$4 sm:$0xff]  }
  0x59   :  { %281 = vmatpush1.bf16.msra.mxu0 %v1076_v14  ;;  %v1107_v38 = vld [vmem:[#allocation10 + $0x114] ss:$8 sps:$4 sm:$0xff]   ;;  %v1102_v39 = vld [vmem:[#allocation10 + $0x10] ss:$8 sps:$4 sm:$0xff]   ;;  %v1110_v41 = vld [vmem:[#allocation10 + $0x24] ss:$8 sps:$4 sm:$0xff]  }
  0x5a   :  { %322 = vmatpush1.bf16.msra.mxu1 %v1077_v15  ;;  %282 = vmatprep.subr.bf16.mxu0 %v1078_v17  ;;  %v1105_v40 = vld [vmem:[#allocation10 + $0x110] ss:$8 sps:$4 sm:$0xff]   ;;  %v1113_v42 = vld [vmem:[#allocation10 + $0x124] ss:$8 sps:$4 sm:$0xff]   ;;  %v1108_v43 = vld [vmem:[#allocation10 + $0x20] ss:$8 sps:$4 sm:$0xff]  }
  0x5b   :  { %323 = vmatprep.subr.bf16.mxu1 %v1080_v18  ;;  %v1111_v44 = vld [vmem:[#allocation10 + $0x120] ss:$8 sps:$4 sm:$0xff]   ;;  %v1116_v45 = vld [vmem:[#allocation10 + $0x34] ss:$8 sps:$4 sm:$0xff]   ;;  %v1114_v47 = vld [vmem:[#allocation10 + $0x30] ss:$8 sps:$4 sm:$0xff]  }
  0x5c   :  { %v1119_v46 = vld [vmem:[#allocation10 + $0x134] ss:$8 sps:$4 sm:$0xff]   ;;  %v1117_v48 = vld [vmem:[#allocation10 + $0x130] ss:$8 sps:$4 sm:$0xff]   ;;  %v1122_v49 = vld [vmem:[#allocation10 + $0x44] ss:$8 sps:$4 sm:$0xff]  }
  0x5d   :  { %283 = vmatpush1.bf16.msra.mxu0 %v1082_v19  ;;  %v1125_v50 = vld [vmem:[#allocation10 + $0x144] ss:$8 sps:$4 sm:$0xff]   ;;  %v1120_v51 = vld [vmem:[#allocation10 + $0x40] ss:$8 sps:$4 sm:$0xff]   ;;  %v1128_v53 = vld [vmem:[#allocation10 + $0x54] ss:$8 sps:$4 sm:$0xff]  }
  0x5e   :  { %324 = vmatpush1.bf16.msra.mxu1 %v1083_v20  ;;  %284 = vmatprep.subr.bf16.mxu0 %v1084_v21  ;;  %v1123_v52 = vld [vmem:[#allocation10 + $0x140] ss:$8 sps:$4 sm:$0xff]   ;;  %v1131_v54 = vld [vmem:[#allocation10 + $0x154] ss:$8 sps:$4 sm:$0xff]   ;;  %v1126_v55 = vld [vmem:[#allocation10 + $0x50] ss:$8 sps:$4 sm:$0xff]  }
  0x5f   :  { %325 = vmatprep.subr.bf16.mxu1 %v1086_v22  ;;  %v1129_v56 = vld [vmem:[#allocation10 + $0x150] ss:$8 sps:$4 sm:$0xff]   ;;  %v1134_v57 = vld [vmem:[#allocation10 + $0x64] ss:$8 sps:$4 sm:$0xff]   ;;  %v1132_v59 = vld [vmem:[#allocation10 + $0x60] ss:$8 sps:$4 sm:$0xff]  }
  0x60   :  { %v1137_v58 = vld [vmem:[#allocation10 + $0x164] ss:$8 sps:$4 sm:$0xff]   ;;  %v1135_v60 = vld [vmem:[#allocation10 + $0x160] ss:$8 sps:$4 sm:$0xff]   ;;  %v1140_v61 = vld [vmem:[#allocation10 + $0x74] ss:$8 sps:$4 sm:$0xff]  }
  0x61   :  { %285 = vmatpush1.bf16.msra.mxu0 %v1088_v23  ;;  %v1143_v62 = vld [vmem:[#allocation10 + $0x174] ss:$8 sps:$4 sm:$0xff]   ;;  %v1138_v63 = vld [vmem:[#allocation10 + $0x70] ss:$8 sps:$4 sm:$0xff]   ;;  %v1146_v1 = vld [vmem:[#allocation10 + $0x84] ss:$8 sps:$4 sm:$0xff]  }
  0x62   :  { %326 = vmatpush1.bf16.msra.mxu1 %v1089_v24  ;;  %286 = vmatprep.subr.bf16.mxu0 %v1090_v25  ;;  %v1141_v0 = vld [vmem:[#allocation10 + $0x170] ss:$8 sps:$4 sm:$0xff]   ;;  %v1149_v2 = vld [vmem:[#allocation10 + $0x184] ss:$8 sps:$4 sm:$0xff]   ;;  %v1144_v3 = vld [vmem:[#allocation10 + $0x80] ss:$8 sps:$4 sm:$0xff]  }
  0x63   :  { %327 = vmatprep.subr.bf16.mxu1 %v1092_v26  ;;  %v1147_v4 = vld [vmem:[#allocation10 + $0x180] ss:$8 sps:$4 sm:$0xff]   ;;  %v1152_v5 = vld [vmem:[#allocation10 + $0x94] ss:$8 sps:$4 sm:$0xff]   ;;  %v1150_v7 = vld [vmem:[#allocation10 + $0x90] ss:$8 sps:$4 sm:$0xff]  }
  0x64   :  { %v1155_v6 = vld [vmem:[#allocation10 + $0x194] ss:$8 sps:$4 sm:$0xff]   ;;  %v1153_v8 = vld [vmem:[#allocation10 + $0x190] ss:$8 sps:$4 sm:$0xff]   ;;  %v1158_v9 = vld [vmem:[#allocation10 + $0xa4] ss:$8 sps:$4 sm:$0xff]  }
  0x65   :  { %287 = vmatpush1.bf16.msra.mxu0 %v1094_v27  ;;  %v1161_v10 = vld [vmem:[#allocation10 + $0x1a4] ss:$8 sps:$4 sm:$0xff]   ;;  %v1156_v11 = vld [vmem:[#allocation10 + $0xa0] ss:$8 sps:$4 sm:$0xff]   ;;  %v1164_v13 = vld [vmem:[#allocation10 + $0xb4] ss:$8 sps:$4 sm:$0xff]  }
  0x66   :  { %328 = vmatpush1.bf16.msra.mxu1 %v1095_v28  ;;  %803 = vmatprep.subr.bf16.mxu0 %v1101_v29  ;;  %v1159_v12 = vld [vmem:[#allocation10 + $0x1a0] ss:$8 sps:$4 sm:$0xff]   ;;  %v1167_v14 = vld [vmem:[#allocation10 + $0x1b4] ss:$8 sps:$4 sm:$0xff]   ;;  %v1162_v15 = vld [vmem:[#allocation10 + $0xb0] ss:$8 sps:$4 sm:$0xff]  }
  0x67   :  { %762 = vmatprep.subr.bf16.mxu1 %v1098_v30  ;;  %v1165_v16 = vld [vmem:[#allocation10 + $0x1b0] ss:$8 sps:$4 sm:$0xff]   ;;  %v1170_v17 = vld [vmem:[#allocation10 + $0xc4] ss:$8 sps:$4 sm:$0xff]   ;;  %v1168_v19 = vld [vmem:[#allocation10 + $0xc0] ss:$8 sps:$4 sm:$0xff]  }
  0x68   :  { %v1173_v18 = vld [vmem:[#allocation10 + $0x1c4] ss:$8 sps:$4 sm:$0xff]   ;;  %v1171_v20 = vld [vmem:[#allocation10 + $0x1c0] ss:$8 sps:$4 sm:$0xff]   ;;  %v1176_v21 = vld [vmem:[#allocation10 + $0xd4] ss:$8 sps:$4 sm:$0xff]  }
  0x69   :  { %v1179_v22 = vld [vmem:[#allocation10 + $0x1d4] ss:$8 sps:$4 sm:$0xff]   ;;  %v1174_v23 = vld [vmem:[#allocation10 + $0xd0] ss:$8 sps:$4 sm:$0xff]   ;;  %v1182_v25 = vld [vmem:[#allocation10 + $0xe4] ss:$8 sps:$4 sm:$0xff]  }
  0x6a   :  { %v1177_v24 = vld [vmem:[#allocation10 + $0x1d0] ss:$8 sps:$4 sm:$0xff]   ;;  %v1185_v26 = vld [vmem:[#allocation10 + $0x1e4] ss:$8 sps:$4 sm:$0xff]   ;;  %v1180_v27 = vld [vmem:[#allocation10 + $0xe0] ss:$8 sps:$4 sm:$0xff]  }
  0x6b   :  { %v1183_v28 = vld [vmem:[#allocation10 + $0x1e0] ss:$8 sps:$4 sm:$0xff]   ;;  %v1188_v29 = vld [vmem:[#allocation10 + $0xf4] ss:$8 sps:$4 sm:$0xff]  }
  0x6c   :  { %v1191_v30 = vld [vmem:[#allocation10 + $0x1f4] ss:$8 sps:$4 sm:$0xff]  }
  0xc2   :  { %v93_v31 = vpop.permute.xlu0 %92 }
  0xc3   :  { %96 = vst.msk [vmem:[#allocation2] sm:$0xff] %vm95_vm1, %v93_v31  ;;  %v1186_v31 = vld [vmem:[#allocation10 + $0xf0] ss:$8 sps:$4 sm:$0xff]  }
  0xc6   :  { %v100_v32 = vpop.permute.xlu0 %99 }
  0xc7   :  { %103 = vst.msk [vmem:[#allocation2] sm:$0xff] %vm102_vm2, %v100_v32  ;;  %v1189_v32 = vld [vmem:[#allocation10 + $0x1f0] ss:$8 sps:$4 sm:$0xff]  }
  0xce   :  { %v104_v33 = vld [vmem:[#allocation2] sm:$0xff] }
  0xcf   :  { %v105_v36 = vpack.c.bf16 %v104_v33, %v104_v33  ;;  %v132_v33 = vlaneseq }
  0xd1   :  { %973 = vmatmul.mubr.msk.bf16.vlgmr.msra.gmra.mrb[0].mxu0 %vm272_vm3, %v105_v36  ;;  %974 = vmatmul.mubr.msk.bf16.vlgmr.msra.gmra.mrb[0].mxu1 %vm272_vm3, %v105_v36 }
  0xd2   :  { %763 = vmatpush1.bf16.msra.mxu1 %v1096_v34  ;;  %804 = vmatpush1.bf16.msra.mxu0 %v1099_v35  ;;  %v133_v34 = vshrl.u32 %v132_v33, 7 }
  0xd3   :  { %764 = vmatprep.subr.bf16.mxu1 %v1104_v37  ;;  %805 = vmatprep.subr.bf16.mxu0 %v1107_v38  ;;  %v130_v37 = vld [vmem:[%s1461_s4] sm:$0xf] }
  0xd4   :  { %v1431_v35 = vsub.s32 0, %v133_v34  ;;  %v142_v36 = vsub.s32 2, %v133_v34  ;;  %v138_v38 = vsub.s32 1, %v133_v34 }
  0xd6   :  { %765 = vmatpush1.bf16.msra.mxu1 %v1102_v39  ;;  %806 = vmatpush1.bf16.msra.mxu0 %v1105_v40  ;;  %v146_v39 = vsub.s32 3, %v133_v34  ;;  %v135_v40 = vrot.slane %v130_v37, %v1431_v35 }
  0xd7   :  { %766 = vmatprep.subr.bf16.mxu1 %v1110_v41  ;;  %807 = vmatprep.subr.bf16.mxu0 %v1113_v42  ;;  %v143_v41 = vrot.slane %v130_v37, %v142_v36  ;;  %v139_v42 = vrot.slane %v130_v37, %v138_v38 }
  0xda   :  { %767 = vmatpush1.bf16.msra.mxu1 %v1108_v43  ;;  %808 = vmatpush1.bf16.msra.mxu0 %v1111_v44  ;;  %v147_v43 = vrot.slane %v130_v37, %v146_v39 }
  0xdb   :  { %768 = vmatprep.subr.bf16.mxu1 %v1116_v45  ;;  %809 = vmatprep.subr.bf16.mxu0 %v1119_v46 }
  0xde   :  { %769 = vmatpush1.bf16.msra.mxu1 %v1114_v47  ;;  %810 = vmatpush1.bf16.msra.mxu0 %v1117_v48 }
  0xdf   :  { %770 = vmatprep.subr.bf16.mxu1 %v1122_v49  ;;  %811 = vmatprep.subr.bf16.mxu0 %v1125_v50 }
  0xe2   :  { %771 = vmatpush1.bf16.msra.mxu1 %v1120_v51  ;;  %812 = vmatpush1.bf16.msra.mxu0 %v1123_v52 }
  0xe3   :  { %772 = vmatprep.subr.bf16.mxu1 %v1128_v53  ;;  %813 = vmatprep.subr.bf16.mxu0 %v1131_v54 }
  0xe6   :  { %773 = vmatpush1.bf16.msra.mxu1 %v1126_v55  ;;  %814 = vmatpush1.bf16.msra.mxu0 %v1129_v56 }
  0xe7   :  { %774 = vmatprep.subr.bf16.mxu1 %v1134_v57  ;;  %815 = vmatprep.subr.bf16.mxu0 %v1137_v58 }
  0xea   :  { %775 = vmatpush1.bf16.msra.mxu1 %v1132_v59  ;;  %816 = vmatpush1.bf16.msra.mxu0 %v1135_v60 }
  0xeb   :  { %776 = vmatprep.subr.bf16.mxu1 %v1140_v61  ;;  %817 = vmatprep.subr.bf16.mxu0 %v1143_v62 }
  0xee   :  { %777 = vmatpush1.bf16.msra.mxu1 %v1138_v63  ;;  %818 = vmatpush1.bf16.msra.mxu0 %v1141_v0  ;;  %v1325_v0 = vmov 1966171168  }
  0xef   :  { %778 = vmatprep.subr.bf16.mxu1 %v1146_v1  ;;  %819 = vmatprep.subr.bf16.mxu0 %v1149_v2  ;;  %v869_v1 = vunpack.c.l.s4 %v1325_v0  ;;  %v1039_v2 = vld.sshfl [vmem:[%s1464_s7] sm:$0x11 pattern:$0x75316420] }
  0xf2   :  { %779 = vmatpush1.bf16.msra.mxu1 %v1144_v3  ;;  %820 = vmatpush1.bf16.msra.mxu0 %v1147_v4  ;;  %v870_v3 = vunpack.c.0.s8 %v869_v1  ;;  %v867_v4 = vcombine.high %v1039_v2, %v1039_v2 }
  0xf3   :  { %780 = vmatprep.subr.bf16.mxu1 %v1152_v5  ;;  %821 = vmatprep.subr.bf16.mxu0 %v1155_v6 }
  0xf4   :  { %v873_v5 = vsub.s32 %v870_v3, %v133_v34 }
  0xf6   :  { %781 = vmatpush1.bf16.msra.mxu1 %v1150_v7  ;;  %822 = vmatpush1.bf16.msra.mxu0 %v1153_v8  ;;  %v881_v6 = vrot.slane %v867_v4, %v873_v5  ;;  %v874_v7 = vrot.slane %v1039_v2, %v873_v5  ;;  %v849_v8 = vld [vmem:[#allocation3] sm:$0x1] }
  0xf7   :  { %782 = vmatprep.subr.bf16.mxu1 %v1158_v9  ;;  %823 = vmatprep.subr.bf16.mxu0 %v1161_v10  ;;  %v430_v9 = vld [vmem:[%s1463_s6] sm:$0x3]  ;;  %s1326_s6 = smov [#allocation12]  }
  0xf8   :  { %852 = vperm.xlu1 %1058, %v849_v8   ;;  %v435_v10 = vrot.slane %v430_v9, %v1431_v35  ;;  %s938_s7 = sshll.u32 %s1326_s6, 4  ;;  %s939_s7 = int_to_ptr.vmem [resolvable:$true] %s938_s7 }
  0xf9   :  { %s1284_s0 = scalar_lea.vmem %s939_s7, 16  ;;  %s1288_s14 = scalar_lea.vmem %s939_s7, 32 }
  0xfa   :  { %783 = vmatpush1.bf16.msra.mxu1 %v1156_v11  ;;  %824 = vmatpush1.bf16.msra.mxu0 %v1159_v12  ;;  %v439_v11 = vrot.slane %v430_v9, %v138_v38  ;;  %p1285_p4 = scmp.ne.s32.totalorder %s939_s7, %s1284_s0  ;;  %p1289_p5 = scmp.lt.s32.totalorder %s939_s7, %s939_s7 }
  0xfb   :  { %784 = vmatprep.subr.bf16.mxu1 %v1164_v13  ;;  %825 = vmatprep.subr.bf16.mxu0 %v1167_v14  ;;  %p1290_p6 = scmp.lt.s32.totalorder %s1288_s14, %s1284_s0 }
  0xfd   :  { %p1291_p7 = por %p1290_p6, %p1289_p5 }
  0xfe   :  { %785 = vmatpush1.bf16.msra.mxu1 %v1162_v15  ;;  %826 = vmatpush1.bf16.msra.mxu0 %v1165_v16 }
  0xff   :  { %786 = vmatprep.subr.bf16.mxu1 %v1170_v17  ;;  %827 = vmatprep.subr.bf16.mxu0 %v1173_v18  ;;  %p1292_p8 = pnand %p1291_p7, %p1285_p4 }
 0x102   :  { %787 = vmatpush1.bf16.msra.mxu1 %v1168_v19  ;;  %828 = vmatpush1.bf16.msra.mxu0 %v1171_v20 }
 0x103   :  { %788 = vmatprep.subr.bf16.mxu1 %v1176_v21  ;;  %829 = vmatprep.subr.bf16.mxu0 %v1179_v22 }
 0x106   :  { %789 = vmatpush1.bf16.msra.mxu1 %v1174_v23  ;;  %830 = vmatpush1.bf16.msra.mxu0 %v1177_v24 }
 0x107   :  { %790 = vmatprep.subr.bf16.mxu1 %v1182_v25  ;;  %831 = vmatprep.subr.bf16.mxu0 %v1185_v26 }
 0x10a   :  { %791 = vmatpush1.bf16.msra.mxu1 %v1180_v27  ;;  %832 = vmatpush1.bf16.msra.mxu0 %v1183_v28 }
 0x10b   :  { %792 = vmatprep.subr.bf16.mxu1 %v1188_v29  ;;  %833 = vmatprep.subr.bf16.mxu0 %v1191_v30 }
 0x10e   :  { %793 = vmatpush1.bf16.msra.mxu1 %v1186_v31  ;;  %834 = vmatpush1.bf16.msra.mxu0 %v1189_v32 }
 0x177   :  { %v853_v28 = vpop.permute.xlu1 %852 }
 0x178   :  { %v858_v29 = vrot.slane %v853_v28, %v1431_v35 }
 0x1a4   :  { %v310_v44 = vpop.f32.mrb[0].mxu0  ;;  %v351_v45 = vpop.f32.mrb[0].mxu1 }
 0x1a5   :  { %v311_v46 = vadd.f32 %v310_v44, %v135_v40  ;;  %v352_v47 = vadd.f32 %v351_v45, %v143_v41  ;;  %v312_v48 = vpop.f32.mrb[1].mxu0  ;;  %v353_v49 = vpop.f32.mrb[1].mxu1 }
 0x1a6   :  { %v313_v50 = vadd.f32 %v312_v48, %v139_v42  ;;  %v354_v51 = vadd.f32 %v353_v49, %v147_v43  ;;  %v314_v52 = vpop.f32.mrb[2].mxu0  ;;  %v355_v53 = vpop.f32.mrb[2].mxu1 }
 0x1a7   :  { %v358_v54 = vmax.f32 %v311_v46, 0.0  ;;  %v360_v55 = vmax.f32 %v352_v47, 0.0  ;;  %v315_v56 = vpop.f32.mrb[3].mxu0  ;;  %v356_v57 = vpop.f32.mrb[3].mxu1 }
 0x1a8   :  { %v359_v58 = vmax.f32 %v313_v50, 0.0  ;;  %v361_v59 = vmax.f32 %v354_v51, 0.0 }
 0x1a9   :  { %v362_v62 = vpack.c.bf16 %v358_v54, %v358_v54  ;;  %v364_v63 = vpack.c.bf16 %v360_v55, %v360_v55 }
 0x1aa   :  { %v363_v60 = vpack.c.bf16 %v359_v58, %v359_v58  ;;  %v365_v61 = vpack.c.bf16 %v361_v59, %v361_v59 }
 0x1ac   :  { %794 = vmatprep.mubr.bf16.mxu1 %v363_v60  ;;  %835 = vmatprep.mubr.bf16.mxu0 %v365_v61 }
 0x1ad   :  { %795 = vmatmul.mubr.bf16.vlgmr.msra.gmra.mrb[4].mxu1 %v362_v62  ;;  %836 = vmatmul.mubr.bf16.vlgmr.msra.gmra.mrb[4].mxu0 %v364_v63 }
 0x1ae   :  { %916 = vmatprep.mubr.bf16.mxu1 %v881_v6 }
 0x280   :  { %v796_v12 = vpop.f32.mrb[4].mxu1  ;;  %v837_v13 = vpop.f32.mrb[4].mxu0 }
 0x281   :  { %v797_v14 = vadd.f32 %v796_v12, %v435_v10  ;;  %v798_v15 = vpop.f32.mrb[5].mxu1  ;;  %v839_v16 = vpop.f32.mrb[5].mxu0 }
 0x282   :  { %v799_v17 = vadd.f32 %v798_v15, %v439_v11  ;;  %v800_v18 = vpop.f32.mrb[6].mxu1  ;;  %v841_v19 = vpop.f32.mrb[6].mxu0 }
 0x283   :  { %v838_v20 = vadd.f32 %v837_v13, %v797_v14  ;;  %v801_v21 = vpop.f32.mrb[7].mxu1  ;;  %v842_v22 = vpop.f32.mrb[7].mxu0 }
 0x284   :  { %v840_v23 = vadd.f32 %v839_v16, %v799_v17 }
 0x285   :  { %v844_v24 = vmax.f32 %v838_v20, 0.0 }
 0x286   :  { %v845_v25 = vmax.f32 %v840_v23, 0.0 }
 0x287   :  { %v847_v27 = vpack.c.bf16 %v844_v24, %v844_v24 }
 0x288   :  { %v848_v26 = vpack.c.bf16 %v845_v25, %v845_v25 }
 0x28a   :  { %884 = vmatprep.subr.bf16.mxu1 %v848_v26 }
 0x28b   :  { %885 = vmatpush1.bf16.xpose.msra.mxu1 %v847_v27 }
 0x292   :  { %917 = vmatmul.mubr.bf16.vlgmr.msra.gmra.mrb[8].mxu1 %v874_v7 }
 0x365   :  { %v918_v30 = vpop.f32.mrb[8].mxu1 }
 0x366   :  { %v919_v31 = vadd.f32 %v918_v30, %v858_v29  ;;  %v920_v32 = vpop.f32.mrb[9].mxu1 }
 0x367   :  { %v921_v33 = vpop.f32.mrb[10].mxu1 }
 0x368   :  { %v1040_v34 = vmul.f32 -1.442695, %v919_v31  ;;  %v922_v36 = vpop.f32.mrb[11].mxu1 }
 0x36a   :  { %1192 = vpow2.f32 %v1040_v34 }
 0x374   :  { %v1193_v37 = vpop.eup %1192 }
 0x375   :  { %v927_v38 = vadd.f32 1.0, %v1193_v37 }
 0x377   :  { %1194 = vrcp.f32 %v927_v38 }
 0x381   :  { %v1195_v39 = vpop.eup %1194 }
 0x382   :  { %931 = vst.msk [vmem:[#allocation12] sm:$0x1] %vm930_vm4, %v1195_v39 }
 0x383   :  { %1295 = shalt.err (!%p1292_p8)
}
 0x384   :  { %s1296_s24 = scalar_lea.hbm %s1466_s9, 16 }
 0x385   :  { %p1297_p9 = scmp.ne.s32.totalorder %s1466_s9, %s1296_s24  ;;  %p1300_p10 = scmp.lt.u32.totalorder %s1296_s24, %s1466_s9 }
 0x387   :  { %p1302_p11 = pnand %p1300_p10, %p1297_p9 }
 0x389   :  { %1305 = shalt.err (!%p1302_p11)
}
 0x38a   :  { %941 = dma.vmem_to_hbm [thread:$0]  %s939_s7, 16, %s1466_s9, [#allocation6]  }
 0x38b   :  { %1312 = dma.done.wait [#allocation6], 16  }
 0x38c   :  { %1313 = vsyncadd [#allocation6], 4294967280 }
 0x38d   :  { %945 = vsyncpa [#allocation5], 1 }
 0x38e   :  { %946 = vsyncpa [#allocation8], 1 }
 0x38f   :  { %947 = vsyncpa [#allocation11], 1 }
 0x390   :  { %948 = vsyncpa [#allocation6], 1 }

</bundles_post_ra>
